<compile_context>
chip_gen: v7x
topology: tpu7x:2x2x1
jax: 0.10.0
libtpu: 0.0.40
codegen_flags: <defaults>
</compile_context>

<pallas_src>
import functools

import jax
import jax.numpy as jnp
from jax import lax
from jax.experimental import pallas as pl
from jax.experimental.pallas import tpu as pltpu

_LANE = 128  # lane width (last dim of a vreg tile)


def _round_up(x, m):
    return ((x + m - 1) // m) * m


def _mlp_kernel(x_ref, w_in_ref, b_in_ref, w_h_ref, b_h_ref, w_out_ref,
                b_out_ref, o_ref, *, n_layer, unroll):
    """One batch tile of the whole MLP, fully resident in VMEM.

    x_ref     : (TB, Fp)  bf16
    w_in_ref  : (Fp, Hp)  bf16     b_in_ref  : (1, Hp) f32
    w_h_ref   : (Hp, Hp)  bf16     b_h_ref   : (1, Hp) f32
    w_out_ref : (Hp, Op)  bf16     b_out_ref : (1, Op) f32
    o_ref     : (TB, Op)  f32
    """
    x = x_ref[...]

    # Input layer: bf16 MXU matmul with f32 accumulation, + bias, ReLU.
    h = jnp.dot(x, w_in_ref[...], preferred_element_type=jnp.float32)
    h = jnp.maximum(h + b_in_ref[...], 0.0)

    # Shared hidden layer applied n_layer times.
    w_h = w_h_ref[...]
    # Hoist the (1, Hp) -> (TB, Hp) bias broadcast out of the unrolled loop
    # (JAX does not CSE broadcast_in_dim).
    b_h = jnp.broadcast_to(b_h_ref[...], h.shape)

    def body(_, carry):
        z = jnp.dot(carry.astype(w_h.dtype), w_h,
                    preferred_element_type=jnp.float32) + b_h
        return jnp.maximum(z, 0.0)

    h = lax.fori_loop(0, n_layer, body, h, unroll=unroll)

    # Output layer (no activation); lane-dense (Op multiple of 128) f32 store.
    out = jnp.dot(h.astype(w_out_ref.dtype), w_out_ref[...],
                  preferred_element_type=jnp.float32)
    o_ref[...] = (out + b_out_ref[...]).astype(o_ref.dtype)


def net_forward(x, params, *, n_layer, batch_tile=None):
    """Pallas-backed forward pass of Net.

    x: (B, n_feature) float32
    params: dict with 'w_in' (F,H), 'b_in' (H,), 'w_h' (H,H), 'b_h' (H,),
            'w_out' (H,O), 'b_out' (O,)   (weights stored as (in, out))
    """
    B, F = x.shape
    H = params["w_in"].shape[1]
    O = params["w_out"].shape[1]

    # Lane-pad every feature dim to a multiple of 128 for dense vector ops/stores.
    Fp = _round_up(F, _LANE)
    Hp = _round_up(H, _LANE)
    Op = _round_up(O, _LANE)

    # Batch tile: >= 128 rows, capped at 512; batch padded to a multiple of it.
    if batch_tile is None:
        batch_tile = min(512, _round_up(max(B, 1), _LANE))
    TB = batch_tile
    Bp = _round_up(B, TB)

    f32, bf16 = jnp.float32, jnp.bfloat16

    def pad2(a, shape, dtype):
        z = jnp.zeros(shape, dtype)
        return z.at[: a.shape[0], : a.shape[1]].set(a.astype(dtype))

    # Zero padding preserves semantics exactly: padded inputs/weights/bias rows
    # and columns contribute 0 to every dot product and ReLU(0) = 0.
    x_p = pad2(x, (Bp, Fp), bf16)
    w_in = pad2(params["w_in"], (Fp, Hp), bf16)
    w_h = pad2(params["w_h"], (Hp, Hp), bf16)
    w_out = pad2(params["w_out"], (Hp, Op), bf16)
    b_in = pad2(params["b_in"].reshape(1, H), (1, Hp), f32)
    b_h = pad2(params["b_h"].reshape(1, H), (1, Hp), f32)
    b_out = pad2(params["b_out"].reshape(1, O), (1, Op), f32)

    # Bound code size / vreg pressure for deep shared-layer chains.
    unroll = True if n_layer <= 8 else 4
    kernel = functools.partial(_mlp_kernel, n_layer=n_layer, unroll=unroll)

    grid = (Bp // TB,)
    resident = lambda shape: pl.BlockSpec(shape, lambda i: (0, 0))

    # Rough VMEM budget: resident bf16 weights + f32 biases, double-buffered
    # batch tiles, and in-kernel f32 activation temporaries.
    # TODO(synk): for very large n_hidden (~4000+), tile the hidden dim with a
    # K grid axis instead of keeping w_h fully resident (v7x VMEM is 64 MiB).
    weight_bytes = 2 * (Fp * Hp + Hp * Hp + Hp * Op) + 4 * (2 * Hp + Op)
    act_bytes = 2 * (TB * Fp * 2) + 2 * (TB * Op * 4) + 4 * (TB * Hp * 4)
    vmem_limit = int(min(max(1.5 * (weight_bytes + act_bytes), 16 << 20),
                         60 << 20))

    flops = 2 * B * (F * H + n_layer * H * H + H * O)
    bytes_accessed = Bp * Fp * 2 + weight_bytes + Bp * Op * 4

    out_p = pl.pallas_call(
        kernel,
        out_shape=jax.ShapeDtypeStruct((Bp, Op), f32),
        grid=grid,
        in_specs=[
            pl.BlockSpec((TB, Fp), lambda i: (i, 0)),   # x tile, pipelined
            resident((Fp, Hp)), resident((1, Hp)),      # input layer
            resident((Hp, Hp)), resident((1, Hp)),      # shared hidden layer
            resident((Hp, Op)), resident((1, Op)),      # output layer
        ],
        out_specs=pl.BlockSpec((TB, Op), lambda i: (i, 0)),
        compiler_params=pltpu.CompilerParams(
            dimension_semantics=("parallel",),
            vmem_limit_bytes=vmem_limit,
        ),
        cost_estimate=pl.CostEstimate(
            flops=flops, transcendentals=0, bytes_accessed=bytes_accessed),
    )(x_p, w_in, b_in, w_h, b_h, w_out, b_out)

    return out_p[:B, :O]


def init_params(key, n_feature, n_hidden, n_output):
    """Deterministic synthetic parameters (PyTorch nn.Linear-style uniform init)."""
    ks = jax.random.split(key, 6)

    def linear(kw, kb, fan_in, fan_out):
        bound = 1.0 / jnp.sqrt(jnp.float32(fan_in))
        # Stored as (in, out): equivalent to torch's (out, in) weight, transposed.
        w = jax.random.uniform(kw, (fan_in, fan_out), jnp.float32, -bound, bound)
        b = jax.random.uniform(kb, (fan_out,), jnp.float32, -bound, bound)
        return w, b

    w_in, b_in = linear(ks[0], ks[1], n_feature, n_hidden)
    w_h, b_h = linear(ks[2], ks[3], n_hidden, n_hidden)
    w_out, b_out = linear(ks[4], ks[5], n_hidden, n_output)
    return {
        "w_in": w_in, "b_in": b_in,
        "w_h": w_h, "b_h": b_h,
        "w_out": w_out, "b_out": b_out,
    }


def net_forward_ref(x, params, *, n_layer, dtype=jnp.bfloat16):
    """Pure-JAX reference with the same bf16-operand / f32-accumulation math."""
    def dot(a, w):
        return jnp.dot(a.astype(dtype), w.astype(dtype),
                       preferred_element_type=jnp.float32)

    h = jnp.maximum(dot(x, params["w_in"]) + params["b_in"], 0.0)
    for _ in range(n_layer):
        h = jnp.maximum(dot(h, params["w_h"]) + params["b_h"], 0.0)
    return dot(h, params["w_out"]) + params["b_out"]


if __name__ == "__main__":
    # Small shapes consistent with the module: Net(n_feature, n_hidden, n_output, n_layer)
    B, n_feature, n_hidden, n_output, n_layer = 8, 16, 32, 4, 3

    key = jax.random.PRNGKey(0)
    k_x, k_p = jax.random.split(key)
    x = jax.random.normal(k_x, (B, n_feature), dtype=jnp.float32)
    params = init_params(k_p, n_feature, n_hidden, n_output)

    out = jax.block_until_ready(net_forward(x, params, n_layer=n_layer))
    ref = net_forward_ref(x, params, n_layer=n_layer)

    assert out.shape == (B, n_output)
    assert jnp.allclose(out, ref, atol=1e-3, rtol=1e-3), "mismatch vs JAX reference"

    print("KERNEL_OK")
</pallas_src>

<mosaic_0001>
module attributes {stable_mosaic.version = 11 : i64} {
  func.func @_mlp_kernel(%arg0: i32, %arg1: memref<128x128xbf16, #tpu.memory_space<vmem>>, %arg2: memref<128x128xbf16, #tpu.memory_space<vmem>>, %arg3: memref<1x128xf32, #tpu.memory_space<vmem>>, %arg4: memref<128x128xbf16, #tpu.memory_space<vmem>>, %arg5: memref<1x128xf32, #tpu.memory_space<vmem>>, %arg6: memref<128x128xbf16, #tpu.memory_space<vmem>>, %arg7: memref<1x128xf32, #tpu.memory_space<vmem>>, %arg8: memref<128x128xf32, #tpu.memory_space<vmem>>) attributes {dimension_semantics = [#tpu.dimension_semantics<parallel>], iteration_bounds = array<i64: 1>, scalar_prefetch = 0 : i64, scratch_operands = 0 : i64, tpu.core_type = #tpu.core_type<tc>, window_params = [{transform_indices = @transform_0, window_bounds = array<i64: 128, 128>}, {pipeline_mode = #tpu.pipeline_mode<synchronous>, transform_indices = @transform_1, window_bounds = array<i64: 128, 128>}, {pipeline_mode = #tpu.pipeline_mode<synchronous>, transform_indices = @transform_2, window_bounds = array<i64: 1, 128>}, {pipeline_mode = #tpu.pipeline_mode<synchronous>, transform_indices = @transform_3, window_bounds = array<i64: 128, 128>}, {pipeline_mode = #tpu.pipeline_mode<synchronous>, transform_indices = @transform_4, window_bounds = array<i64: 1, 128>}, {pipeline_mode = #tpu.pipeline_mode<synchronous>, transform_indices = @transform_5, window_bounds = array<i64: 128, 128>}, {pipeline_mode = #tpu.pipeline_mode<synchronous>, transform_indices = @transform_6, window_bounds = array<i64: 1, 128>}, {transform_indices = @transform_7, window_bounds = array<i64: 128, 128>}]} {
    %c0 = arith.constant 0 : index
    %c0_0 = arith.constant 0 : index
    %0 = vector.load %arg1[%c0, %c0_0] : memref<128x128xbf16, #tpu.memory_space<vmem>>, vector<128x128xbf16>
    %c0_1 = arith.constant 0 : index
    %c0_2 = arith.constant 0 : index
    %1 = vector.load %arg2[%c0_1, %c0_2] : memref<128x128xbf16, #tpu.memory_space<vmem>>, vector<128x128xbf16>
    %cst = arith.constant dense<0.000000e+00> : vector<128x128xf32>
    %2 = tpu.matmul %0, %1, %cst {dimension_numbers = #tpu.dot_dimension_numbers<[1], [0], [0], [1], [0, 0, 1, 1], [], []>} : vector<128x128xbf16>, vector<128x128xbf16>, vector<128x128xf32> -> vector<128x128xf32>
    %c0_3 = arith.constant 0 : index
    %c0_4 = arith.constant 0 : index
    %3 = vector.load %arg3[%c0_3, %c0_4] : memref<1x128xf32, #tpu.memory_space<vmem>>, vector<1x128xf32>
    %4 = vector.broadcast %3 : vector<1x128xf32> to vector<128x128xf32>
    %5 = arith.addf %2, %4 : vector<128x128xf32>
    %cst_5 = arith.constant 0.000000e+00 : f32
    %6 = vector.broadcast %cst_5 : f32 to vector<128x128xf32>
    %7 = arith.maximumf %5, %6 : vector<128x128xf32>
    %c0_6 = arith.constant 0 : index
    %c0_7 = arith.constant 0 : index
    %8 = vector.load %arg4[%c0_6, %c0_7] : memref<128x128xbf16, #tpu.memory_space<vmem>>, vector<128x128xbf16>
    %c0_8 = arith.constant 0 : index
    %c0_9 = arith.constant 0 : index
    %9 = vector.load %arg5[%c0_8, %c0_9] : memref<1x128xf32, #tpu.memory_space<vmem>>, vector<1x128xf32>
    %10 = vector.shape_cast %9 : vector<1x128xf32> to vector<1x128xf32>
    %11 = vector.broadcast %10 : vector<1x128xf32> to vector<128x128xf32>
    %c0_i32 = arith.constant 0 : i32
    %12 = arith.truncf %7 : vector<128x128xf32> to vector<128x128xbf16>
    %cst_10 = arith.constant dense<0.000000e+00> : vector<128x128xf32>
    %13 = tpu.matmul %12, %8, %cst_10 {dimension_numbers = #tpu.dot_dimension_numbers<[1], [0], [0], [1], [0, 0, 1, 1], [], []>} : vector<128x128xbf16>, vector<128x128xbf16>, vector<128x128xf32> -> vector<128x128xf32>
    %14 = arith.addf %13, %11 : vector<128x128xf32>
    %cst_11 = arith.constant 0.000000e+00 : f32
    %15 = vector.broadcast %cst_11 : f32 to vector<128x128xf32>
    %16 = arith.maximumf %14, %15 : vector<128x128xf32>
    %c1_i32 = arith.constant 1 : i32
    %17 = arith.truncf %16 : vector<128x128xf32> to vector<128x128xbf16>
    %cst_12 = arith.constant dense<0.000000e+00> : vector<128x128xf32>
    %18 = tpu.matmul %17, %8, %cst_12 {dimension_numbers = #tpu.dot_dimension_numbers<[1], [0], [0], [1], [0, 0, 1, 1], [], []>} : vector<128x128xbf16>, vector<128x128xbf16>, vector<128x128xf32> -> vector<128x128xf32>
    %19 = arith.addf %18, %11 : vector<128x128xf32>
    %cst_13 = arith.constant 0.000000e+00 : f32
    %20 = vector.broadcast %cst_13 : f32 to vector<128x128xf32>
    %21 = arith.maximumf %19, %20 : vector<128x128xf32>
    %c2_i32 = arith.constant 2 : i32
    %22 = arith.truncf %21 : vector<128x128xf32> to vector<128x128xbf16>
    %cst_14 = arith.constant dense<0.000000e+00> : vector<128x128xf32>
    %23 = tpu.matmul %22, %8, %cst_14 {dimension_numbers = #tpu.dot_dimension_numbers<[1], [0], [0], [1], [0, 0, 1, 1], [], []>} : vector<128x128xbf16>, vector<128x128xbf16>, vector<128x128xf32> -> vector<128x128xf32>
    %24 = arith.addf %23, %11 : vector<128x128xf32>
    %cst_15 = arith.constant 0.000000e+00 : f32
    %25 = vector.broadcast %cst_15 : f32 to vector<128x128xf32>
    %26 = arith.maximumf %24, %25 : vector<128x128xf32>
    %27 = arith.truncf %26 : vector<128x128xf32> to vector<128x128xbf16>
    %c0_16 = arith.constant 0 : index
    %c0_17 = arith.constant 0 : index
    %28 = vector.load %arg6[%c0_16, %c0_17] : memref<128x128xbf16, #tpu.memory_space<vmem>>, vector<128x128xbf16>
    %cst_18 = arith.constant dense<0.000000e+00> : vector<128x128xf32>
    %29 = tpu.matmul %27, %28, %cst_18 {dimension_numbers = #tpu.dot_dimension_numbers<[1], [0], [0], [1], [0, 0, 1, 1], [], []>} : vector<128x128xbf16>, vector<128x128xbf16>, vector<128x128xf32> -> vector<128x128xf32>
    %c0_19 = arith.constant 0 : index
    %c0_20 = arith.constant 0 : index
    %30 = vector.load %arg7[%c0_19, %c0_20] : memref<1x128xf32, #tpu.memory_space<vmem>>, vector<1x128xf32>
    %31 = vector.broadcast %30 : vector<1x128xf32> to vector<128x128xf32>
    %32 = arith.addf %29, %31 : vector<128x128xf32>
    %c0_21 = arith.constant 0 : index
    %c0_22 = arith.constant 0 : index
    %33 = vector.load %arg8[%c0_21, %c0_22] : memref<128x128xf32, #tpu.memory_space<vmem>>, vector<128x128xf32>
    tpu.vector_store %arg8[%c0_21, %c0_22], %32 {strides = array<i32>} : memref<128x128xf32, #tpu.memory_space<vmem>>, vector<128x128xf32>,
    return
  }
  func.func @transform_0(%arg0: i32) -> (i32, i32) {
    %c0_i32 = arith.constant 0 : i32
    %c0_i32_0 = arith.constant 0 : i32
    return %arg0, %c0_i32 : i32, i32
  }
  func.func @transform_1(%arg0: i32) -> (i32, i32) {
    %c0_i32 = arith.constant 0 : i32
    %c0_i32_0 = arith.constant 0 : i32
    %c0_i32_1 = arith.constant 0 : i32
    return %c0_i32, %c0_i32_0 : i32, i32
  }
  func.func @transform_2(%arg0: i32) -> (i32, i32) {
    %c0_i32 = arith.constant 0 : i32
    %c0_i32_0 = arith.constant 0 : i32
    %c0_i32_1 = arith.constant 0 : i32
    return %c0_i32, %c0_i32_0 : i32, i32
  }
  func.func @transform_3(%arg0: i32) -> (i32, i32) {
    %c0_i32 = arith.constant 0 : i32
    %c0_i32_0 = arith.constant 0 : i32
    %c0_i32_1 = arith.constant 0 : i32
    return %c0_i32, %c0_i32_0 : i32, i32
  }
  func.func @transform_4(%arg0: i32) -> (i32, i32) {
    %c0_i32 = arith.constant 0 : i32
    %c0_i32_0 = arith.constant 0 : i32
    %c0_i32_1 = arith.constant 0 : i32
    return %c0_i32, %c0_i32_0 : i32, i32
  }
  func.func @transform_5(%arg0: i32) -> (i32, i32) {
    %c0_i32 = arith.constant 0 : i32
    %c0_i32_0 = arith.constant 0 : i32
    %c0_i32_1 = arith.constant 0 : i32
    return %c0_i32, %c0_i32_0 : i32, i32
  }
  func.func @transform_6(%arg0: i32) -> (i32, i32) {
    %c0_i32 = arith.constant 0 : i32
    %c0_i32_0 = arith.constant 0 : i32
    %c0_i32_1 = arith.constant 0 : i32
    return %c0_i32, %c0_i32_0 : i32, i32
  }
  func.func @transform_7(%arg0: i32) -> (i32, i32) {
    %c0_i32 = arith.constant 0 : i32
    %c0_i32_0 = arith.constant 0 : i32
    return %arg0, %c0_i32 : i32, i32
  }
}

</mosaic_0001>

<bundles_post_ra>
// kernel: tpu_custom_call.1
= control target key start
LH: loop header
LB: loop body
LE: loop exit
PB: predicated region body
PF: predicated region fallthrough
CT: control target
= control target key end

     0   :  { %12 = vsyncpa [#allocation3], 0  ;;  %s1714_s0 = inlined_call_operand.hbm [shape: bf16[128,128], index: 0, kind: input, shape index: {}]   ;;  %s1715_s1 = inlined_call_operand.hbm [shape: bf16[128,128], index: 1, kind: input, shape index: {}]   ;;  %s1716_s2 = inlined_call_operand.vmem [shape: f32[1,128], index: 2, kind: input, shape index: {}]   ;;  %s1717_s3 = inlined_call_operand.hbm [shape: bf16[128,128], index: 3, kind: input, shape index: {}]   ;;  %s1718_s4 = inlined_call_operand.vmem [shape: f32[1,128], index: 4, kind: input, shape index: {}]   ;;  %s1719_s5 = inlined_call_operand.hbm [shape: bf16[128,128], index: 5, kind: input, shape index: {}]   ;;  %s1720_s6 = inlined_call_operand.vmem [shape: f32[1,128], index: 6, kind: input, shape index: {}]   ;;  %s1721_s7 = inlined_call_operand.hbm [shape: f32[128,128], index: 7, kind: output, shape index: {}]  }
   0x1   :  { %13 = vsyncpa [#allocation6], 0 }
   0x2   :  { %14 = vsyncpa [#allocation9], 0 }
   0x3   :  { %15 = vsyncpa [#allocation4], 0  ;;  %s1426_s24 = smov [#allocation5]   ;;  %s1427_s26 = smov [#allocation2]  }
   0x4   :  { %s33_s25 = sshll.u32 %s1426_s24, 4  ;;  %s21_s27 = sshll.u32 %s1427_s26, 4  ;;  %s34_s25 = int_to_ptr.vmem [resolvable:$true] %s33_s25  ;;  %s1475_s27 = int_to_ptr.vmem [resolvable:$true] %s21_s27 }
   0x5   :  { %s1308_s30 = scalar_lea.hbm %s1715_s1, 1024 }
   0x6   :  { %p1309_p0 = scmp.ne.s32.totalorder %s1715_s1, %s1308_s30  ;;  %p1312_p1 = scmp.lt.u32.totalorder %s1308_s30, %s1715_s1 }
   0x8   :  { %p1314_p2 = pnand %p1312_p1, %p1309_p0 }
   0xa   :  { %1317 = shalt.err (!%p1314_p2)
}
   0xb   :  { %s1318_s12 = scalar_lea.vmem %s34_s25, 1024  ;;  %p1323_p4 = scmp.lt.s32.totalorder %s34_s25, %s34_s25 }
   0xc   :  { %p1319_p3 = scmp.ne.s32.totalorder %s34_s25, %s1318_s12  ;;  %p1324_p5 = scmp.lt.s32.totalorder %s1318_s12, %s1318_s12 }
   0xe   :  { %p1325_p6 = por %p1324_p5, %p1323_p4 }
  0x10   :  { %p1326_p7 = pnand %p1325_p6, %p1319_p3 }
  0x12   :  { %1329 = shalt.err (!%p1326_p7)
}
  0x13   :  { %s1428_s13 = smov 64   ;;  %s1429_s14 = smov 4  }
  0x14   :  { %39 = dma.hbm_to_vmem [thread:$0]  %s1715_s1, 1024, %s34_s25, [#allocation6], %s1428_s13, %s1428_s13, %s1429_s14  }
  0x15   :  { %s1330_s19 = scalar_lea.hbm %s1714_s0, 1024 }
  0x16   :  { %p1331_p8 = scmp.ne.s32.totalorder %s1714_s0, %s1330_s19  ;;  %p1334_p9 = scmp.lt.u32.totalorder %s1330_s19, %s1714_s0 }
  0x18   :  { %p1336_p10 = pnand %p1334_p9, %p1331_p8 }
  0x1a   :  { %1339 = shalt.err (!%p1336_p10)
}
  0x1b   :  { %s1340_s24 = scalar_lea.vmem %s1475_s27, 1024  ;;  %p1345_p12 = scmp.lt.s32.totalorder %s1475_s27, %s1475_s27 }
  0x1c   :  { %p1341_p11 = scmp.ne.s32.totalorder %s1475_s27, %s1340_s24  ;;  %p1346_p13 = scmp.lt.s32.totalorder %s1340_s24, %s1340_s24 }
  0x1e   :  { %p1347_p0 = por %p1346_p13, %p1345_p12 }
  0x20   :  { %p1348_p1 = pnand %p1347_p0, %p1341_p11 }
  0x22   :  { %1351 = shalt.err (!%p1348_p1)
}
  0x23   :  { %27 = dma.hbm_to_vmem [thread:$0]  %s1714_s0, 1024, %s1475_s27, [#allocation3], %s1428_s13, %s1428_s13, %s1429_s14  }
  0x24   :  { %s1430_s26 = smov [#allocation7]   ;;  %s1431_s29 = smov [#allocation8]  }
  0x25   :  { %s47_s28 = sshll.u32 %s1430_s26, 4  ;;  %s61_s30 = sshll.u32 %s1431_s29, 4  ;;  %s48_s28 = int_to_ptr.vmem [resolvable:$true] %s47_s28  ;;  %s1512_s30 = int_to_ptr.vmem [resolvable:$true] %s61_s30 }
  0x26   :  { %s1352_s10 = scalar_lea.hbm %s1717_s3, 1024 }
  0x27   :  { %p1353_p2 = scmp.ne.s32.totalorder %s1717_s3, %s1352_s10  ;;  %p1356_p3 = scmp.lt.u32.totalorder %s1352_s10, %s1717_s3 }
  0x29   :  { %p1358_p4 = pnand %p1356_p3, %p1353_p2 }
  0x2b   :  { %1361 = shalt.err (!%p1358_p4)
}
  0x2c   :  { %s1362_s0 = scalar_lea.vmem %s48_s28, 1024  ;;  %p1367_p6 = scmp.lt.s32.totalorder %s48_s28, %s48_s28 }
  0x2d   :  { %p1363_p5 = scmp.ne.s32.totalorder %s48_s28, %s1362_s0  ;;  %p1368_p7 = scmp.lt.s32.totalorder %s1362_s0, %s1362_s0 }
  0x2f   :  { %p1369_p8 = por %p1368_p7, %p1367_p6 }
  0x31   :  { %p1370_p9 = pnand %p1369_p8, %p1363_p5 }
  0x33   :  { %1373 = shalt.err (!%p1370_p9)
}
  0x34   :  { %53 = dma.hbm_to_vmem [thread:$0]  %s1717_s3, 1024, %s48_s28, [#allocation6], %s1428_s13, %s1428_s13, %s1429_s14  }
  0x35   :  { %s1374_s20 = scalar_lea.hbm %s1719_s5, 1024 }
  0x36   :  { %p1375_p10 = scmp.ne.s32.totalorder %s1719_s5, %s1374_s20  ;;  %p1378_p11 = scmp.lt.u32.totalorder %s1374_s20, %s1719_s5 }
  0x38   :  { %p1380_p12 = pnand %p1378_p11, %p1375_p10 }
  0x3a   :  { %1383 = shalt.err (!%p1380_p12)
}
  0x3b   :  { %s1384_s1 = scalar_lea.vmem %s1512_s30, 1024  ;;  %p1389_p0 = scmp.lt.s32.totalorder %s1512_s30, %s1512_s30 }
  0x3c   :  { %p1385_p13 = scmp.ne.s32.totalorder %s1512_s30, %s1384_s1  ;;  %p1390_p1 = scmp.lt.s32.totalorder %s1384_s1, %s1384_s1 }
  0x3e   :  { %p1391_p2 = por %p1390_p1, %p1389_p0 }
  0x40   :  { %p1392_p3 = pnand %p1391_p2, %p1385_p13 }
  0x42   :  { %1395 = shalt.err (!%p1392_p3)
}
  0x43   :  { %67 = dma.hbm_to_vmem [thread:$0]  %s1719_s5, 1024, %s1512_s30, [#allocation9], %s1428_s13, %s1428_s13, %s1429_s14  }
  0x44   :  { %1418 = dma.done.wait [#allocation3], 1024  }
  0x45   :  { %1419 = vsyncadd [#allocation3], 4294966272 }
  0x46   :  { %1420 = dma.done.wait [#allocation6], 2048  }
  0x47   :  { %1421 = vsyncadd [#allocation6], 4294965248 }
  0x48   :  { %1422 = dma.done.wait [#allocation9], 1024  }
  0x49   :  { %1423 = vsyncadd [#allocation9], 4294966272  ;;  %v1276_v0 = vld [vmem:[#allocation5] sm:$0xff]   ;;  %v1277_v1 = vld [vmem:[#allocation5 + $0x8] sm:$0xff]  }
  0x4a   :  { %1091 = vmatprep.subr.bf16.mxu0 %v1276_v0  ;;  %v1278_v2 = vld [vmem:[#allocation5 + $0x10] sm:$0xff]   ;;  %v1279_v3 = vld [vmem:[#allocation5 + $0x18] sm:$0xff]   ;;  %v1284_v4 = vld [vmem:[#allocation2] sm:$0xff]  }
  0x4b   :  { %1092 = vmatpush3.bf16.msra.mxu0 %v1276_v0  ;;  %1107 = vmatprep.mubr.bf16.mxu0 %v1284_v4  ;;  %v1280_v5 = vld [vmem:[#allocation5 + $0x20] sm:$0xff]   ;;  %v1281_v6 = vld [vmem:[#allocation5 + $0x28] sm:$0xff]   ;;  %v1282_v9 = vld [vmem:[#allocation5 + $0x30] sm:$0xff]  }
  0x4c   :  { %1093 = vmatprep.subr.bf16.mxu0 %v1277_v1  ;;  %v1549_v7 = vld [vmem:[#allocation7] sm:$0xff]   ;;  %v1551_v8 = vld [vmem:[#allocation7 + $0x8] sm:$0xff]   ;;  %v1556_v10 = vld [vmem:[#allocation7 + $0x10] sm:$0xff]  }
  0x4d   :  { %1123 = vmatprep.subr.bf16.mxu1 %v1549_v7  ;;  %v1283_v11 = vld [vmem:[#allocation5 + $0x38] sm:$0xff]   ;;  %v1564_v13 = vld [vmem:[#allocation7 + $0x20] sm:$0xff]   ;;  %v1285_v14 = vld [vmem:[#allocation2 + $0x8] sm:$0xff]  }
  0x4e   :  { %1124 = vmatpush3.bf16.msra.mxu1 %v1549_v7  ;;  %v1558_v12 = vld [vmem:[#allocation7 + $0x18] sm:$0xff]   ;;  %v1286_v15 = vld [vmem:[#allocation2 + $0x10] sm:$0xff]   ;;  %v1568_v16 = vld [vmem:[#allocation7 + $0x28] sm:$0xff]  }
  0x4f   :  { %1094 = vmatpush3.bf16.msra.mxu0 %v1277_v1  ;;  %1125 = vmatprep.subr.bf16.mxu1 %v1551_v8  ;;  %v1287_v17 = vld [vmem:[#allocation2 + $0x18] sm:$0xff]   ;;  %v1288_v18 = vld [vmem:[#allocation2 + $0x20] sm:$0xff]   ;;  %v1289_v19 = vld [vmem:[#allocation2 + $0x28] sm:$0xff]  }
  0x50   :  { %1095 = vmatprep.subr.bf16.mxu0 %v1278_v2  ;;  %v1290_v20 = vld [vmem:[#allocation2 + $0x30] sm:$0xff]   ;;  %v1291_v21 = vld [vmem:[#allocation2 + $0x38] sm:$0xff]   ;;  %v1601_v24 = vld [vmem:[%s1716_s2] ss:$0 sm:$0xff] }
  0x51   :  { %v1585_v22 = vld [vmem:[#allocation7 + $0x30] sm:$0xff]   ;;  %v1591_v23 = vld [vmem:[#allocation7 + $0x38] sm:$0xff]  }
  0x52   :  { %1126 = vmatpush3.bf16.msra.mxu1 %v1551_v8 }
  0x53   :  { %1096 = vmatpush3.bf16.msra.mxu0 %v1278_v2  ;;  %1127 = vmatprep.subr.bf16.mxu1 %v1556_v10 }
  0x54   :  { %1097 = vmatprep.subr.bf16.mxu0 %v1279_v3 }
  0x56   :  { %1128 = vmatpush3.bf16.msra.mxu1 %v1556_v10 }
  0x57   :  { %1098 = vmatpush3.bf16.msra.mxu0 %v1279_v3  ;;  %1129 = vmatprep.subr.bf16.mxu1 %v1558_v12 }
  0x58   :  { %1099 = vmatprep.subr.bf16.mxu0 %v1280_v5 }
  0x5a   :  { %1130 = vmatpush3.bf16.msra.mxu1 %v1558_v12 }
  0x5b   :  { %1100 = vmatpush3.bf16.msra.mxu0 %v1280_v5  ;;  %1131 = vmatprep.subr.bf16.mxu1 %v1564_v13 }
  0x5c   :  { %1101 = vmatprep.subr.bf16.mxu0 %v1281_v6 }
  0x5e   :  { %1132 = vmatpush3.bf16.msra.mxu1 %v1564_v13 }
  0x5f   :  { %1102 = vmatpush3.bf16.msra.mxu0 %v1281_v6  ;;  %1133 = vmatprep.subr.bf16.mxu1 %v1568_v16 }
  0x60   :  { %1103 = vmatprep.subr.bf16.mxu0 %v1282_v9 }
  0x62   :  { %1134 = vmatpush3.bf16.msra.mxu1 %v1568_v16 }
  0x63   :  { %1104 = vmatpush3.bf16.msra.mxu0 %v1282_v9  ;;  %1135 = vmatprep.subr.bf16.mxu1 %v1585_v22 }
  0x64   :  { %1105 = vmatprep.subr.bf16.mxu0 %v1283_v11 }
  0x66   :  { %1136 = vmatpush3.bf16.msra.mxu1 %v1585_v22 }
  0x67   :  { %1106 = vmatpush3.bf16.msra.mxu0 %v1283_v11  ;;  %1137 = vmatprep.subr.bf16.mxu1 %v1591_v23 }
  0x68   :  { %1155 = vmatprep.subr.bf16.mxu0 %v1549_v7 }
  0x6a   :  { %1108 = vmatmul.mubr.bf16.vlgmr.msra.gmra.mrb[0].mxu0 %v1285_v14  ;;  %1138 = vmatpush3.bf16.msra.mxu1 %v1591_v23 }
  0x6b   :  { %1111 = vmatprep.mubr.bf16.mxu0 %v1286_v15  ;;  %1156 = vmatpush3.bf16.msra.mxu0 %v1549_v7 }
  0x6c   :  { %1157 = vmatprep.subr.bf16.mxu0 %v1551_v8  ;;  %1187 = vmatprep.subr.bf16.mxu1 %v1549_v7 }
  0x6f   :  { %1158 = vmatpush3.bf16.msra.mxu0 %v1551_v8 }
  0x70   :  { %1159 = vmatprep.subr.bf16.mxu0 %v1556_v10 }
  0x72   :  { %1112 = vmatmul.mubr.bf16.gmra.mrb[4].mxu0 %v1287_v17 }
  0x73   :  { %1115 = vmatprep.mubr.bf16.mxu0 %v1288_v18  ;;  %1160 = vmatpush3.bf16.msra.mxu0 %v1556_v10 }
  0x74   :  { %1161 = vmatprep.subr.bf16.mxu0 %v1558_v12 }
  0x77   :  { %1162 = vmatpush3.bf16.msra.mxu0 %v1558_v12 }
  0x78   :  { %1163 = vmatprep.subr.bf16.mxu0 %v1564_v13 }
  0x7a   :  { %1116 = vmatmul.mubr.bf16.gmra.mrb[8].mxu0 %v1289_v19 }
  0x7b   :  { %1119 = vmatprep.mubr.bf16.mxu0 %v1290_v20  ;;  %1164 = vmatpush3.bf16.msra.mxu0 %v1564_v13 }
  0x7c   :  { %1165 = vmatprep.subr.bf16.mxu0 %v1568_v16 }
  0x7f   :  { %1166 = vmatpush3.bf16.msra.mxu0 %v1568_v16 }
  0x80   :  { %1167 = vmatprep.subr.bf16.mxu0 %v1585_v22 }
  0x82   :  { %1120 = vmatmul.mubr.bf16.gmra.mrb[12].mxu0 %v1291_v21 }
  0x83   :  { %1168 = vmatpush3.bf16.msra.mxu0 %v1585_v22 }
  0x84   :  { %1169 = vmatprep.subr.bf16.mxu0 %v1591_v23 }
  0x87   :  { %1170 = vmatpush3.bf16.msra.mxu0 %v1591_v23 }
 0x13d   :  { %v1109_v25 = vpop.f32.mrb[0].mxu0 }
 0x13e   :  { %v261_v26 = vadd.f32 %v1109_v25, %v1601_v24  ;;  %v252_v27 = vpop.f32.mrb[1].mxu0 }
 0x13f   :  { %v253_v28 = vadd.f32 %v1601_v24, %v252_v27  ;;  %v1110_v29 = vpop.f32.mrb[2].mxu0 }
 0x140   :  { %v264_v30 = vadd.f32 %v1110_v29, %v1601_v24  ;;  %v255_v31 = vpop.f32.mrb[3].mxu0  ;;  %v317_v33 = vmax.f32 %v261_v26, 0.0 }
 0x141   :  { %v256_v32 = vadd.f32 %v1601_v24, %v255_v31  ;;  %v315_v35 = vmax.f32 %v253_v28, 0.0 }
 0x142   :  { %v318_v34 = vmax.f32 %v264_v30, 0.0 }
 0x143   :  { %v316_v36 = vmax.f32 %v256_v32, 0.0 }
 0x144   :  { %v355_v37 = vpack.c.bf16 %v318_v34, %v317_v33 }
 0x145   :  { %v1113_v38 = vpop.f32.mrb[4].mxu0  ;;  %v354_v39 = vpack.c.bf16 %v316_v36, %v315_v35 }
 0x146   :  { %v277_v40 = vadd.f32 %v1113_v38, %v1601_v24  ;;  %v268_v41 = vpop.f32.mrb[5].mxu0 }
 0x147   :  { %v269_v42 = vadd.f32 %v1601_v24, %v268_v41  ;;  %v1114_v43 = vpop.f32.mrb[6].mxu0  ;;  %1139 = vmatprep.mubr.bf16.mxu1 %v354_v39 }
 0x148   :  { %v280_v44 = vadd.f32 %v1114_v43, %v1601_v24  ;;  %v271_v45 = vpop.f32.mrb[7].mxu0  ;;  %1140 = vmatmul.mubr.bf16.vlgmr.msra.gmra.mrb[0].mxu1 %v355_v37  ;;  %v321_v47 = vmax.f32 %v277_v40, 0.0 }
 0x149   :  { %v272_v46 = vadd.f32 %v1601_v24, %v271_v45  ;;  %1188 = vmatpush3.bf16.msra.mxu1 %v1549_v7  ;;  %v319_v49 = vmax.f32 %v269_v42, 0.0 }
 0x14a   :  { %v322_v48 = vmax.f32 %v280_v44, 0.0  ;;  %1189 = vmatprep.subr.bf16.mxu1 %v1551_v8 }
 0x14b   :  { %v320_v50 = vmax.f32 %v272_v46, 0.0 }
 0x14c   :  { %v357_v51 = vpack.c.bf16 %v322_v48, %v321_v47 }
 0x14d   :  { %v356_v52 = vpack.c.bf16 %v320_v50, %v319_v49  ;;  %v1117_v53 = vpop.f32.mrb[8].mxu0  ;;  %1190 = vmatpush3.bf16.msra.mxu1 %v1551_v8 }
 0x14e   :  { %v293_v54 = vadd.f32 %v1117_v53, %v1601_v24  ;;  %v284_v55 = vpop.f32.mrb[9].mxu0  ;;  %1191 = vmatprep.subr.bf16.mxu1 %v1556_v10 }
 0x14f   :  { %v285_v56 = vadd.f32 %v1601_v24, %v284_v55  ;;  %v1118_v57 = vpop.f32.mrb[10].mxu0  ;;  %1143 = vmatprep.mubr.bf16.mxu1 %v356_v52 }
 0x150   :  { %v296_v58 = vadd.f32 %v1118_v57, %v1601_v24  ;;  %v287_v59 = vpop.f32.mrb[11].mxu0  ;;  %1144 = vmatmul.mubr.bf16.gmra.mrb[4].mxu1 %v357_v51  ;;  %v325_v61 = vmax.f32 %v293_v54, 0.0 }
 0x151   :  { %v288_v60 = vadd.f32 %v1601_v24, %v287_v59  ;;  %1192 = vmatpush3.bf16.msra.mxu1 %v1556_v10  ;;  %v323_v63 = vmax.f32 %v285_v56, 0.0 }
 0x152   :  { %v326_v62 = vmax.f32 %v296_v58, 0.0  ;;  %1193 = vmatprep.subr.bf16.mxu1 %v1558_v12 }
 0x153   :  { %v324_v0 = vmax.f32 %v288_v60, 0.0 }
 0x154   :  { %v359_v1 = vpack.c.bf16 %v326_v62, %v325_v61 }
 0x155   :  { %v358_v2 = vpack.c.bf16 %v324_v0, %v323_v63  ;;  %v1121_v3 = vpop.f32.mrb[12].mxu0  ;;  %1194 = vmatpush3.bf16.msra.mxu1 %v1558_v12 }
 0x156   :  { %v309_v4 = vadd.f32 %v1121_v3, %v1601_v24  ;;  %v300_v5 = vpop.f32.mrb[13].mxu0  ;;  %1195 = vmatprep.subr.bf16.mxu1 %v1564_v13 }
 0x157   :  { %v301_v6 = vadd.f32 %v1601_v24, %v300_v5  ;;  %v1122_v7 = vpop.f32.mrb[14].mxu0  ;;  %1147 = vmatprep.mubr.bf16.mxu1 %v358_v2 }
 0x158   :  { %v312_v8 = vadd.f32 %v1122_v7, %v1601_v24  ;;  %v303_v9 = vpop.f32.mrb[15].mxu0  ;;  %1148 = vmatmul.mubr.bf16.gmra.mrb[8].mxu1 %v359_v1  ;;  %v329_v11 = vmax.f32 %v309_v4, 0.0 }
 0x159   :  { %v304_v10 = vadd.f32 %v1601_v24, %v303_v9  ;;  %1196 = vmatpush3.bf16.msra.mxu1 %v1564_v13  ;;  %v327_v12 = vmax.f32 %v301_v6, 0.0  ;;  %v1637_v13 = vld [vmem:[%s1718_s4] ss:$0 sm:$0xff] }
 0x15a   :  { %v330_v14 = vmax.f32 %v312_v8, 0.0  ;;  %1197 = vmatprep.subr.bf16.mxu1 %v1568_v16 }
 0x15b   :  { %v328_v15 = vmax.f32 %v304_v10, 0.0  ;;  %v1300_v10 = vld [vmem:[#allocation8] sm:$0xff]  }
 0x15c   :  { %v361_v17 = vpack.c.bf16 %v330_v14, %v329_v11  ;;  %v1301_v11 = vld [vmem:[#allocation8 + $0x8] sm:$0xff]   ;;  %1219 = vmatprep.subr.bf16.mxu0 %v1300_v10  ;;  %v1302_v14 = vld [vmem:[#allocation8 + $0x10] sm:$0xff]  }
 0x15d   :  { %v360_v18 = vpack.c.bf16 %v328_v15, %v327_v12  ;;  %1198 = vmatpush3.bf16.msra.mxu1 %v1568_v16  ;;  %v1303_v12 = vld [vmem:[#allocation8 + $0x18] sm:$0xff]   ;;  %v1655_v15 = vld [vmem:[#allocation8 + $0x20] sm:$0xff]  }
 0x15e   :  { %1199 = vmatprep.subr.bf16.mxu1 %v1585_v22 }
 0x15f   :  { %1151 = vmatprep.mubr.bf16.mxu1 %v360_v18 }
 0x160   :  { %1152 = vmatmul.mubr.bf16.gmra.mrb[12].mxu1 %v361_v17  ;;  %v1658_v17 = vld [vmem:[#allocation8 + $0x28] sm:$0xff]  }
 0x161   :  { %1200 = vmatpush3.bf16.msra.mxu1 %v1585_v22 }
 0x162   :  { %1201 = vmatprep.subr.bf16.mxu1 %v1591_v23 }
 0x165   :  { %1202 = vmatpush3.bf16.msra.mxu1 %v1591_v23 }
 0x166   :  { %1251 = vmatprep.subr.bf16.mxu1 %v1300_v10 }
 0x21b   :  { %v1141_v19 = vpop.f32.mrb[0].mxu1 }
 0x21c   :  { %v453_v20 = vadd.f32 %v1141_v19, %v1637_v13  ;;  %v444_v21 = vpop.f32.mrb[1].mxu1 }
 0x21d   :  { %v445_v16 = vadd.f32 %v1637_v13, %v444_v21  ;;  %v1142_v24 = vpop.f32.mrb[2].mxu1 }
 0x21e   :  { %v456_v25 = vadd.f32 %v1142_v24, %v1637_v13  ;;  %v447_v26 = vpop.f32.mrb[3].mxu1  ;;  %v509_v27 = vmax.f32 %v453_v20, 0.0 }
 0x21f   :  { %v448_v22 = vadd.f32 %v1637_v13, %v447_v26  ;;  %v507_v23 = vmax.f32 %v445_v16, 0.0 }
 0x220   :  { %v510_v28 = vmax.f32 %v456_v25, 0.0 }
 0x221   :  { %v508_v29 = vmax.f32 %v448_v22, 0.0 }
 0x222   :  { %v524_v30 = vpack.c.bf16 %v510_v28, %v509_v27 }
 0x223   :  { %v523_v31 = vpack.c.bf16 %v508_v29, %v507_v23  ;;  %v1145_v32 = vpop.f32.mrb[4].mxu1 }
 0x224   :  { %v469_v33 = vadd.f32 %v1145_v32, %v1637_v13  ;;  %v460_v34 = vpop.f32.mrb[5].mxu1 }
 0x225   :  { %v461_v35 = vadd.f32 %v1637_v13, %v460_v34  ;;  %v1146_v36 = vpop.f32.mrb[6].mxu1  ;;  %1171 = vmatprep.mubr.bf16.mxu0 %v523_v31 }
 0x226   :  { %v472_v37 = vadd.f32 %v1146_v36, %v1637_v13  ;;  %v463_v38 = vpop.f32.mrb[7].mxu1  ;;  %1172 = vmatmul.mubr.bf16.vlgmr.msra.gmra.mrb[16].mxu0 %v524_v30  ;;  %v513_v40 = vmax.f32 %v469_v33, 0.0 }
 0x227   :  { %v464_v39 = vadd.f32 %v1637_v13, %v463_v38  ;;  %v511_v42 = vmax.f32 %v461_v35, 0.0  ;;  %1220 = vmatpush3.bf16.msra.mxu0 %v1300_v10 }
 0x228   :  { %v514_v41 = vmax.f32 %v472_v37, 0.0  ;;  %1221 = vmatprep.subr.bf16.mxu0 %v1301_v11 }
 0x229   :  { %v512_v43 = vmax.f32 %v464_v39, 0.0 }
 0x22a   :  { %v526_v44 = vpack.c.bf16 %v514_v41, %v513_v40 }
 0x22b   :  { %v525_v45 = vpack.c.bf16 %v512_v43, %v511_v42  ;;  %v1149_v46 = vpop.f32.mrb[8].mxu1  ;;  %1222 = vmatpush3.bf16.msra.mxu0 %v1301_v11 }
 0x22c   :  { %v485_v47 = vadd.f32 %v1149_v46, %v1637_v13  ;;  %v476_v48 = vpop.f32.mrb[9].mxu1  ;;  %1223 = vmatprep.subr.bf16.mxu0 %v1302_v14 }
 0x22d   :  { %v477_v49 = vadd.f32 %v1637_v13, %v476_v48  ;;  %v1150_v50 = vpop.f32.mrb[10].mxu1  ;;  %1175 = vmatprep.mubr.bf16.mxu0 %v525_v45 }
 0x22e   :  { %v488_v51 = vadd.f32 %v1150_v50, %v1637_v13  ;;  %v479_v52 = vpop.f32.mrb[11].mxu1  ;;  %1176 = vmatmul.mubr.bf16.gmra.mrb[20].mxu0 %v526_v44  ;;  %v517_v54 = vmax.f32 %v485_v47, 0.0 }
 0x22f   :  { %v480_v53 = vadd.f32 %v1637_v13, %v479_v52  ;;  %v515_v56 = vmax.f32 %v477_v49, 0.0  ;;  %1224 = vmatpush3.bf16.msra.mxu0 %v1302_v14 }
 0x230   :  { %v518_v55 = vmax.f32 %v488_v51, 0.0  ;;  %1225 = vmatprep.subr.bf16.mxu0 %v1303_v12 }
 0x231   :  { %v516_v57 = vmax.f32 %v480_v53, 0.0 }
 0x232   :  { %v528_v58 = vpack.c.bf16 %v518_v55, %v517_v54 }
 0x233   :  { %v527_v59 = vpack.c.bf16 %v516_v57, %v515_v56  ;;  %v1153_v60 = vpop.f32.mrb[12].mxu1  ;;  %1226 = vmatpush3.bf16.msra.mxu0 %v1303_v12 }
 0x234   :  { %v501_v61 = vadd.f32 %v1153_v60, %v1637_v13  ;;  %v492_v62 = vpop.f32.mrb[13].mxu1  ;;  %1227 = vmatprep.subr.bf16.mxu0 %v1655_v15 }
 0x235   :  { %v493_v63 = vadd.f32 %v1637_v13, %v492_v62  ;;  %v1154_v0 = vpop.f32.mrb[14].mxu1  ;;  %1179 = vmatprep.mubr.bf16.mxu0 %v527_v59 }
 0x236   :  { %v504_v1 = vadd.f32 %v1154_v0, %v1637_v13  ;;  %v495_v2 = vpop.f32.mrb[15].mxu1  ;;  %1180 = vmatmul.mubr.bf16.gmra.mrb[24].mxu0 %v528_v58  ;;  %v521_v4 = vmax.f32 %v501_v61, 0.0 }
 0x237   :  { %v496_v3 = vadd.f32 %v1637_v13, %v495_v2  ;;  %v519_v6 = vmax.f32 %v493_v63, 0.0  ;;  %1228 = vmatpush3.bf16.msra.mxu0 %v1655_v15 }
 0x238   :  { %v522_v5 = vmax.f32 %v504_v1, 0.0  ;;  %1229 = vmatprep.subr.bf16.mxu0 %v1658_v17 }
 0x239   :  { %v520_v7 = vmax.f32 %v496_v3, 0.0 }
 0x23a   :  { %v530_v8 = vpack.c.bf16 %v522_v5, %v521_v4 }
 0x23b   :  { %v529_v9 = vpack.c.bf16 %v520_v7, %v519_v6  ;;  %1230 = vmatpush3.bf16.msra.mxu0 %v1658_v17 }
 0x23d   :  { %1183 = vmatprep.mubr.bf16.mxu0 %v529_v9  ;;  %v1306_v9 = vld [vmem:[#allocation8 + $0x30] sm:$0xff]  }
 0x23e   :  { %1184 = vmatmul.mubr.bf16.gmra.mrb[28].mxu0 %v530_v8  ;;  %1231 = vmatprep.subr.bf16.mxu0 %v1306_v9 }
 0x23f   :  { %1232 = vmatpush3.bf16.msra.mxu0 %v1306_v9 }
 0x2f9   :  { %v1173_v18 = vpop.f32.mrb[16].mxu0 }
 0x2fa   :  { %v574_v19 = vadd.f32 %v1173_v18, %v1637_v13  ;;  %v565_v20 = vpop.f32.mrb[17].mxu0 }
 0x2fb   :  { %v566_v21 = vadd.f32 %v1637_v13, %v565_v20  ;;  %v1174_v16 = vpop.f32.mrb[18].mxu0 }
 0x2fc   :  { %v577_v24 = vadd.f32 %v1174_v16, %v1637_v13  ;;  %v568_v25 = vpop.f32.mrb[19].mxu0  ;;  %v630_v22 = vmax.f32 %v574_v19, 0.0 }
 0x2fd   :  { %v569_v26 = vadd.f32 %v1637_v13, %v568_v25  ;;  %v628_v28 = vmax.f32 %v566_v21, 0.0 }
 0x2fe   :  { %v631_v27 = vmax.f32 %v577_v24, 0.0 }
 0x2ff   :  { %v629_v23 = vmax.f32 %v569_v26, 0.0 }
 0x300   :  { %v645_v29 = vpack.c.bf16 %v631_v27, %v630_v22 }
 0x301   :  { %v644_v30 = vpack.c.bf16 %v629_v23, %v628_v28  ;;  %v1177_v31 = vpop.f32.mrb[20].mxu0 }
 0x302   :  { %v590_v32 = vadd.f32 %v1177_v31, %v1637_v13  ;;  %v581_v33 = vpop.f32.mrb[21].mxu0 }
 0x303   :  { %v582_v34 = vadd.f32 %v1637_v13, %v581_v33  ;;  %v1178_v35 = vpop.f32.mrb[22].mxu0  ;;  %1203 = vmatprep.mubr.bf16.mxu1 %v644_v30 }
 0x304   :  { %v593_v36 = vadd.f32 %v1178_v35, %v1637_v13  ;;  %v584_v37 = vpop.f32.mrb[23].mxu0  ;;  %1204 = vmatmul.mubr.bf16.vlgmr.msra.gmra.mrb[16].mxu1 %v645_v29  ;;  %v634_v39 = vmax.f32 %v590_v32, 0.0 }
 0x305   :  { %v585_v38 = vadd.f32 %v1637_v13, %v584_v37  ;;  %1259 = vmatpush3.bf16.msra.mxu1 %v1300_v10  ;;  %v632_v41 = vmax.f32 %v582_v34, 0.0  ;;  %v1307_v10 = vld [vmem:[#allocation8 + $0x38] sm:$0xff]  }
 0x306   :  { %v635_v40 = vmax.f32 %v593_v36, 0.0  ;;  %1252 = vmatprep.subr.bf16.mxu1 %v1301_v11  ;;  %1233 = vmatprep.subr.bf16.mxu0 %v1307_v10 }
 0x307   :  { %v633_v42 = vmax.f32 %v585_v38, 0.0  ;;  %1234 = vmatpush3.bf16.msra.mxu0 %v1307_v10 }
 0x308   :  { %v647_v43 = vpack.c.bf16 %v635_v40, %v634_v39 }
 0x309   :  { %v646_v44 = vpack.c.bf16 %v633_v42, %v632_v41  ;;  %v1181_v45 = vpop.f32.mrb[24].mxu0  ;;  %1260 = vmatpush3.bf16.msra.mxu1 %v1301_v11 }
 0x30a   :  { %v606_v46 = vadd.f32 %v1181_v45, %v1637_v13  ;;  %v597_v47 = vpop.f32.mrb[25].mxu0  ;;  %1253 = vmatprep.subr.bf16.mxu1 %v1302_v14 }
 0x30b   :  { %v598_v48 = vadd.f32 %v1637_v13, %v597_v47  ;;  %v1182_v49 = vpop.f32.mrb[26].mxu0  ;;  %1207 = vmatprep.mubr.bf16.mxu1 %v646_v44 }
 0x30c   :  { %v609_v50 = vadd.f32 %v1182_v49, %v1637_v13  ;;  %v600_v51 = vpop.f32.mrb[27].mxu0  ;;  %1208 = vmatmul.mubr.bf16.gmra.mrb[20].mxu1 %v647_v43  ;;  %v638_v53 = vmax.f32 %v606_v46, 0.0 }
 0x30d   :  { %v601_v52 = vadd.f32 %v1637_v13, %v600_v51  ;;  %1261 = vmatpush3.bf16.msra.mxu1 %v1302_v14  ;;  %v636_v55 = vmax.f32 %v598_v48, 0.0 }
 0x30e   :  { %v639_v54 = vmax.f32 %v609_v50, 0.0  ;;  %1254 = vmatprep.subr.bf16.mxu1 %v1303_v12 }
 0x30f   :  { %v637_v56 = vmax.f32 %v601_v52, 0.0 }
 0x310   :  { %v649_v57 = vpack.c.bf16 %v639_v54, %v638_v53 }
 0x311   :  { %v648_v58 = vpack.c.bf16 %v637_v56, %v636_v55  ;;  %v1185_v59 = vpop.f32.mrb[28].mxu0  ;;  %1262 = vmatpush3.bf16.msra.mxu1 %v1303_v12 }
 0x312   :  { %v622_v60 = vadd.f32 %v1185_v59, %v1637_v13  ;;  %v613_v61 = vpop.f32.mrb[29].mxu0  ;;  %1255 = vmatprep.subr.bf16.mxu1 %v1655_v15 }
 0x313   :  { %v614_v62 = vadd.f32 %v1637_v13, %v613_v61  ;;  %v1186_v63 = vpop.f32.mrb[30].mxu0  ;;  %1211 = vmatprep.mubr.bf16.mxu1 %v648_v58 }
 0x314   :  { %v625_v0 = vadd.f32 %v1186_v63, %v1637_v13  ;;  %v616_v1 = vpop.f32.mrb[31].mxu0  ;;  %1212 = vmatmul.mubr.bf16.gmra.mrb[24].mxu1 %v649_v57  ;;  %v642_v3 = vmax.f32 %v622_v60, 0.0 }
 0x315   :  { %v617_v2 = vadd.f32 %v1637_v13, %v616_v1  ;;  %1263 = vmatpush3.bf16.msra.mxu1 %v1655_v15  ;;  %v640_v5 = vmax.f32 %v614_v62, 0.0 }
 0x316   :  { %v643_v4 = vmax.f32 %v625_v0, 0.0  ;;  %1256 = vmatprep.subr.bf16.mxu1 %v1658_v17 }
 0x317   :  { %v641_v6 = vmax.f32 %v617_v2, 0.0 }
 0x318   :  { %v651_v7 = vpack.c.bf16 %v643_v4, %v642_v3  ;;  %v1002_v4 = vld [vmem:[%s1720_s6] ss:$0 sm:$0xff]  ;;  %s1432_s6 = smov [#allocation10]  }
 0x319   :  { %v650_v8 = vpack.c.bf16 %v641_v6, %v640_v5  ;;  %1264 = vmatpush3.bf16.msra.mxu1 %v1658_v17  ;;  %s962_s28 = sshll.u32 %s1432_s6, 4  ;;  %s963_s28 = int_to_ptr.vmem [resolvable:$true] %s962_s28 }
 0x31a   :  { %1257 = vmatprep.subr.bf16.mxu1 %v1306_v9  ;;  %s1396_s29 = scalar_lea.vmem %s963_s28, 2048  ;;  %p1401_p5 = scmp.lt.s32.totalorder %s963_s28, %s963_s28 }
 0x31b   :  { %1215 = vmatprep.mubr.bf16.mxu1 %v650_v8  ;;  %p1397_p4 = scmp.ne.s32.totalorder %s963_s28, %s1396_s29  ;;  %p1402_p6 = scmp.lt.s32.totalorder %s1396_s29, %s1396_s29 }
 0x31c   :  { %1216 = vmatmul.mubr.bf16.gmra.mrb[28].mxu1 %v651_v7 }
 0x31d   :  { %1265 = vmatpush3.bf16.msra.mxu1 %v1306_v9  ;;  %p1403_p7 = por %p1402_p6, %p1401_p5 }
 0x31e   :  { %1258 = vmatprep.subr.bf16.mxu1 %v1307_v10 }
 0x31f   :  { %p1404_p8 = pnand %p1403_p7, %p1397_p4 }
 0x321   :  { %1266 = vmatpush3.bf16.msra.mxu1 %v1307_v10 }
 0x3d7   :  { %v1205_v11 = vpop.f32.mrb[16].mxu1 }
 0x3d8   :  { %v695_v14 = vadd.f32 %v1205_v11, %v1637_v13  ;;  %v686_v12 = vpop.f32.mrb[17].mxu1 }
 0x3d9   :  { %v687_v15 = vadd.f32 %v1637_v13, %v686_v12  ;;  %v1206_v18 = vpop.f32.mrb[18].mxu1 }
 0x3da   :  { %v698_v17 = vadd.f32 %v1206_v18, %v1637_v13  ;;  %v689_v19 = vpop.f32.mrb[19].mxu1  ;;  %v751_v21 = vmax.f32 %v695_v14, 0.0 }
 0x3db   :  { %v690_v20 = vadd.f32 %v1637_v13, %v689_v19  ;;  %v749_v24 = vmax.f32 %v687_v15, 0.0 }
 0x3dc   :  { %v752_v16 = vmax.f32 %v698_v17, 0.0 }
 0x3dd   :  { %v750_v25 = vmax.f32 %v690_v20, 0.0 }
 0x3de   :  { %v766_v26 = vpack.c.bf16 %v752_v16, %v751_v21 }
 0x3df   :  { %v765_v22 = vpack.c.bf16 %v750_v25, %v749_v24  ;;  %v1209_v27 = vpop.f32.mrb[20].mxu1 }
 0x3e0   :  { %v711_v28 = vadd.f32 %v1209_v27, %v1637_v13  ;;  %v702_v23 = vpop.f32.mrb[21].mxu1 }
 0x3e1   :  { %v703_v29 = vadd.f32 %v1637_v13, %v702_v23  ;;  %v1210_v30 = vpop.f32.mrb[22].mxu1  ;;  %1235 = vmatprep.mubr.bf16.mxu0 %v765_v22 }
 0x3e2   :  { %v714_v31 = vadd.f32 %v1210_v30, %v1637_v13  ;;  %v705_v32 = vpop.f32.mrb[23].mxu1  ;;  %1236 = vmatmul.mubr.bf16.vlgmr.msra.gmra.mrb[32].mxu0 %v766_v26  ;;  %v755_v34 = vmax.f32 %v711_v28, 0.0 }
 0x3e3   :  { %v706_v33 = vadd.f32 %v1637_v13, %v705_v32  ;;  %v753_v36 = vmax.f32 %v703_v29, 0.0 }
 0x3e4   :  { %v756_v35 = vmax.f32 %v714_v31, 0.0 }
 0x3e5   :  { %v754_v37 = vmax.f32 %v706_v33, 0.0 }
 0x3e6   :  { %v768_v38 = vpack.c.bf16 %v756_v35, %v755_v34 }
 0x3e7   :  { %v767_v39 = vpack.c.bf16 %v754_v37, %v753_v36  ;;  %v1213_v40 = vpop.f32.mrb[24].mxu1 }
 0x3e8   :  { %v727_v41 = vadd.f32 %v1213_v40, %v1637_v13  ;;  %v718_v42 = vpop.f32.mrb[25].mxu1 }
 0x3e9   :  { %v719_v43 = vadd.f32 %v1637_v13, %v718_v42  ;;  %v1214_v44 = vpop.f32.mrb[26].mxu1  ;;  %1239 = vmatprep.mubr.bf16.mxu0 %v767_v39 }
 0x3ea   :  { %v730_v45 = vadd.f32 %v1214_v44, %v1637_v13  ;;  %v721_v46 = vpop.f32.mrb[27].mxu1  ;;  %1240 = vmatmul.mubr.bf16.gmra.mrb[36].mxu0 %v768_v38  ;;  %v759_v48 = vmax.f32 %v727_v41, 0.0 }
 0x3eb   :  { %v722_v47 = vadd.f32 %v1637_v13, %v721_v46  ;;  %v757_v50 = vmax.f32 %v719_v43, 0.0 }
 0x3ec   :  { %v760_v49 = vmax.f32 %v730_v45, 0.0 }
 0x3ed   :  { %v758_v51 = vmax.f32 %v722_v47, 0.0 }
 0x3ee   :  { %v770_v52 = vpack.c.bf16 %v760_v49, %v759_v48 }
 0x3ef   :  { %v769_v53 = vpack.c.bf16 %v758_v51, %v757_v50  ;;  %v1217_v54 = vpop.f32.mrb[28].mxu1 }
 0x3f0   :  { %v743_v55 = vadd.f32 %v1217_v54, %v1637_v13  ;;  %v734_v56 = vpop.f32.mrb[29].mxu1 }
 0x3f1   :  { %v735_v57 = vadd.f32 %v1637_v13, %v734_v56  ;;  %v1218_v58 = vpop.f32.mrb[30].mxu1  ;;  %1243 = vmatprep.mubr.bf16.mxu1 %v769_v53 }
 0x3f2   :  { %v746_v59 = vadd.f32 %v1218_v58, %v1637_v13  ;;  %v737_v60 = vpop.f32.mrb[31].mxu1  ;;  %1244 = vmatmul.mubr.bf16.vlgmr.msra.gmra.mrb[32].mxu1 %v770_v52  ;;  %v763_v62 = vmax.f32 %v743_v55, 0.0 }
 0x3f3   :  { %v738_v61 = vadd.f32 %v1637_v13, %v737_v60  ;;  %v761_v0 = vmax.f32 %v735_v57, 0.0 }
 0x3f4   :  { %v764_v63 = vmax.f32 %v746_v59, 0.0 }
 0x3f5   :  { %v762_v1 = vmax.f32 %v738_v61, 0.0 }
 0x3f6   :  { %v772_v2 = vpack.c.bf16 %v764_v63, %v763_v62 }
 0x3f7   :  { %v771_v3 = vpack.c.bf16 %v762_v1, %v761_v0 }
 0x3f9   :  { %1247 = vmatprep.mubr.bf16.mxu1 %v771_v3 }
 0x3fa   :  { %1248 = vmatmul.mubr.bf16.gmra.mrb[36].mxu1 %v772_v2 }
 0x4b5   :  { %v1237_v5 = vpop.f32.mrb[32].mxu0 }
 0x4b6   :  { %v887_v6 = vadd.f32 %v1237_v5, %v1002_v4  ;;  %v878_v7 = vpop.f32.mrb[33].mxu0 }
 0x4b7   :  { %v879_v8 = vadd.f32 %v1002_v4, %v878_v7  ;;  %v1238_v9 = vpop.f32.mrb[34].mxu0 }
 0x4b8   :  { %943 = vst [vmem:[#allocation10 + $0x10] sm:$0xff] %v887_v6  ;;  %v890_v10 = vadd.f32 %v1238_v9, %v1002_v4  ;;  %v881_v13 = vpop.f32.mrb[35].mxu0 }
 0x4b9   :  { %941 = vst [vmem:[#allocation10] sm:$0xff] %v879_v8  ;;  %v882_v11 = vadd.f32 %v1002_v4, %v881_v13 }
 0x4ba   :  { %944 = vst [vmem:[#allocation10 + $0x18] sm:$0xff] %v890_v10 }
 0x4bb   :  { %942 = vst [vmem:[#allocation10 + $0x8] sm:$0xff] %v882_v11 }
 0x4bd   :  { %v1241_v14 = vpop.f32.mrb[36].mxu0 }
 0x4be   :  { %v903_v12 = vadd.f32 %v1241_v14, %v1002_v4  ;;  %v894_v15 = vpop.f32.mrb[37].mxu0 }
 0x4bf   :  { %v895_v18 = vadd.f32 %v1002_v4, %v894_v15  ;;  %v1242_v17 = vpop.f32.mrb[38].mxu0 }
 0x4c0   :  { %947 = vst [vmem:[#allocation10 + $0x30] sm:$0xff] %v903_v12  ;;  %v906_v19 = vadd.f32 %v1242_v17, %v1002_v4  ;;  %v897_v20 = vpop.f32.mrb[39].mxu0 }
 0x4c1   :  { %945 = vst [vmem:[#allocation10 + $0x20] sm:$0xff] %v895_v18  ;;  %v898_v21 = vadd.f32 %v1002_v4, %v897_v20 }
 0x4c2   :  { %948 = vst [vmem:[#allocation10 + $0x38] sm:$0xff] %v906_v19 }
 0x4c3   :  { %946 = vst [vmem:[#allocation10 + $0x28] sm:$0xff] %v898_v21 }
 0x4c5   :  { %v1245_v16 = vpop.f32.mrb[32].mxu1 }
 0x4c6   :  { %v919_v24 = vadd.f32 %v1245_v16, %v1002_v4  ;;  %v910_v25 = vpop.f32.mrb[33].mxu1 }
 0x4c7   :  { %v911_v26 = vadd.f32 %v1002_v4, %v910_v25  ;;  %v1246_v22 = vpop.f32.mrb[34].mxu1 }
 0x4c8   :  { %951 = vst [vmem:[#allocation10 + $0x50] sm:$0xff] %v919_v24  ;;  %v922_v27 = vadd.f32 %v1246_v22, %v1002_v4  ;;  %v913_v28 = vpop.f32.mrb[35].mxu1 }
 0x4c9   :  { %949 = vst [vmem:[#allocation10 + $0x40] sm:$0xff] %v911_v26  ;;  %v914_v23 = vadd.f32 %v1002_v4, %v913_v28 }
 0x4ca   :  { %952 = vst [vmem:[#allocation10 + $0x58] sm:$0xff] %v922_v27 }
 0x4cb   :  { %950 = vst [vmem:[#allocation10 + $0x48] sm:$0xff] %v914_v23 }
 0x4cd   :  { %v1249_v29 = vpop.f32.mrb[36].mxu1 }
 0x4ce   :  { %v935_v30 = vadd.f32 %v1249_v29, %v1002_v4  ;;  %v926_v31 = vpop.f32.mrb[37].mxu1 }
 0x4cf   :  { %v927_v32 = vadd.f32 %v1002_v4, %v926_v31  ;;  %v1250_v33 = vpop.f32.mrb[38].mxu1 }
 0x4d0   :  { %955 = vst [vmem:[#allocation10 + $0x70] sm:$0xff] %v935_v30  ;;  %v938_v34 = vadd.f32 %v1250_v33, %v1002_v4  ;;  %v929_v35 = vpop.f32.mrb[39].mxu1 }
 0x4d1   :  { %953 = vst [vmem:[#allocation10 + $0x60] sm:$0xff] %v927_v32  ;;  %v930_v36 = vadd.f32 %v1002_v4, %v929_v35 }
 0x4d2   :  { %956 = vst [vmem:[#allocation10 + $0x78] sm:$0xff] %v938_v34 }
 0x4d3   :  { %954 = vst [vmem:[#allocation10 + $0x68] sm:$0xff] %v930_v36 }
 0x4d4   :  { %1407 = shalt.err (!%p1404_p8)
}
 0x4d5   :  { %s1408_s9 = scalar_lea.hbm %s1721_s7, 2048 }
 0x4d6   :  { %p1409_p9 = scmp.ne.s32.totalorder %s1721_s7, %s1408_s9  ;;  %p1412_p10 = scmp.lt.u32.totalorder %s1408_s9, %s1721_s7 }
 0x4d8   :  { %p1414_p11 = pnand %p1412_p10, %p1409_p9 }
 0x4da   :  { %1417 = shalt.err (!%p1414_p11)
}
 0x4db   :  { %s1433_s16 = smov 128   ;;  %s1434_s0 = smov 8  }
 0x4dc   :  { %968 = dma.vmem_to_hbm [thread:$0]  %s963_s28, 2048, %s1721_s7, [#allocation4], %s1433_s16, %s1433_s16, %s1434_s0  }
 0x4dd   :  { %1424 = dma.done.wait [#allocation4], 2048  }
 0x4de   :  { %1425 = vsyncadd [#allocation4], 4294965248 }
 0x4df   :  { %972 = vsyncpa [#allocation3], 1 }
 0x4e0   :  { %973 = vsyncpa [#allocation6], 1 }
 0x4e1   :  { %974 = vsyncpa [#allocation9], 1 }
 0x4e2   :  { %975 = vsyncpa [#allocation4], 1 }

</bundles_post_ra>
